<compile_context>
chip_gen: v7x
topology: tpu7x:2x2x1
jax: 0.10.0
libtpu: 0.0.40
codegen_flags: <defaults>
</compile_context>

<pallas_src>
import functools
import math

import jax
import jax.numpy as jnp
from jax import lax
from jax.experimental import pallas as pl
from jax.experimental.pallas import tpu as pltpu


def _flash_attention_kernel(q_ref, k_ref, v_ref, o_ref, m_sc, l_sc, acc_sc, *, scale):
    # q_ref: (H, tq, E), k_ref: (H, tk, E), v_ref: (H, tk, D), o_ref: (H, tq, D)
    # scratch: m_sc/l_sc (H, tq, 1) f32, acc_sc (H, tq, D) f32
    kv_idx = pl.program_id(2)

    @pl.when(kv_idx == 0)
    def _init():
        m_sc[...] = jnp.full(m_sc.shape, -jnp.inf, dtype=m_sc.dtype)
        l_sc[...] = jnp.zeros(l_sc.shape, dtype=l_sc.dtype)
        acc_sc[...] = jnp.zeros(acc_sc.shape, dtype=acc_sc.dtype)

    # Fold the softmax scale into Q; keep MXU operands in their native dtype.
    q = q_ref[...] * jnp.asarray(scale, dtype=q_ref.dtype)

    # scores[h, q, k] = sum_e q[h, q, e] * k[h, k, e]  (batched over heads, no K^T)
    s = lax.dot_general(
        q, k_ref[...],
        dimension_numbers=(((2,), (2,)), ((0,), (0,))),
        preferred_element_type=jnp.float32,
    )  # (H, tq, tk) f32

    # Online (flash) softmax update over the kv axis.
    m_prev = m_sc[...]
    m_new = jnp.maximum(m_prev, jnp.max(s, axis=-1, keepdims=True))
    alpha = jnp.exp(m_prev - m_new)          # rescale factor for old stats
    p = jnp.exp(s - m_new)                   # (H, tq, tk) f32

    l_sc[...] = alpha * l_sc[...] + jnp.sum(p, axis=-1, keepdims=True)

    # out[h, q, d] += sum_k p[h, q, k] * v[h, k, d]
    pv = lax.dot_general(
        p.astype(v_ref.dtype), v_ref[...],
        dimension_numbers=(((2,), (1,)), ((0,), (0,))),
        preferred_element_type=jnp.float32,
    )  # (H, tq, D) f32
    acc_sc[...] = alpha * acc_sc[...] + pv
    m_sc[...] = m_new

    @pl.when(kv_idx == pl.num_programs(2) - 1)
    def _finalize():
        # Normalization deferred to the last kv step; approx reciprocal -> EUP slot.
        inv_l = pl.reciprocal(l_sc[...], approx=True)
        o_ref[...] = (acc_sc[...] * inv_l).astype(o_ref.dtype)


def _pick_block(dim, target):
    """Largest tile <= target that evenly divides `dim` (prefer multiples of 8)."""
    if dim <= target:
        return dim
    if dim % target == 0:
        return target
    for cand in range(target - (target % 8), 0, -8):
        if cand > 0 and dim % cand == 0:
            return cand
    # TODO(synk): ragged-edge masking instead of a full-extent fallback.
    return dim


def full_attention(queries, keys, values, scale=None, *,
                   block_q=128, block_k=256,
                   vmem_limit_bytes=48 * 1024 * 1024):
    """Pallas equivalent of FullAttention.forward (eval mode, no dropout).

    queries: (B, L, H, E), keys: (B, S, H, E), values: (B, S, H, D)
    returns: (B, L, H, D)
    """
    B, L, H, E = queries.shape
    _, S, _, D = values.shape
    scale = scale if scale is not None else 1.0 / math.sqrt(E)

    # (B, seq, H, dim) -> (B, H, seq, dim): contiguous (H, tile, dim) slabs per step.
    qt = jnp.transpose(queries, (0, 2, 1, 3))
    kt = jnp.transpose(keys, (0, 2, 1, 3))
    vt = jnp.transpose(values, (0, 2, 1, 3))

    tq = _pick_block(L, block_q)
    tk = _pick_block(S, block_k)
    grid = (B, L // tq, S // tk)

    kernel = functools.partial(_flash_attention_kernel, scale=scale)

    out = pl.pallas_call(
        kernel,
        out_shape=jax.ShapeDtypeStruct((B, H, L, D), queries.dtype),
        grid_spec=pltpu.PrefetchScalarGridSpec(
            num_scalar_prefetch=0,
            grid=grid,
            in_specs=[
                pl.BlockSpec((None, H, tq, E), lambda b, qi, ki: (b, 0, qi, 0)),
                pl.BlockSpec((None, H, tk, E), lambda b, qi, ki: (b, 0, ki, 0)),
                pl.BlockSpec((None, H, tk, D), lambda b, qi, ki: (b, 0, ki, 0)),
            ],
            out_specs=pl.BlockSpec((None, H, tq, D), lambda b, qi, ki: (b, 0, qi, 0)),
            scratch_shapes=[
                pltpu.VMEM((H, tq, 1), jnp.float32),   # running max
                pltpu.VMEM((H, tq, 1), jnp.float32),   # running sum
                pltpu.VMEM((H, tq, D), jnp.float32),   # output accumulator
            ],
        ),
        compiler_params=pltpu.CompilerParams(
            dimension_semantics=("parallel", "parallel", "arbitrary"),
            vmem_limit_bytes=vmem_limit_bytes,
        ),
    )(qt, kt, vt)

    # (B, H, L, D) -> (B, L, H, D): matches V.contiguous() layout of the module.
    return jnp.transpose(out, (0, 2, 1, 3))


def _reference_attention(queries, keys, values, scale=None):
    B, L, H, E = queries.shape
    scale = scale if scale is not None else 1.0 / math.sqrt(E)
    scores = jnp.einsum("blhe,bshe->bhls", queries, keys)
    a = jax.nn.softmax(scale * scores, axis=-1)
    return jnp.einsum("bhls,bshd->blhd", a, values)


if __name__ == "__main__":
    # Small shapes consistent with the module's forward signature.
    B, L, S, H, E, D = 2, 8, 8, 4, 32, 32

    key = jax.random.PRNGKey(0)
    kq, kk, kv = jax.random.split(key, 3)
    queries = jax.random.normal(kq, (B, L, H, E), dtype=jnp.float32)
    keys = jax.random.normal(kk, (B, S, H, E), dtype=jnp.float32)
    values = jax.random.normal(kv, (B, S, H, D), dtype=jnp.float32)

    out = full_attention(queries, keys, values)
    out = jax.block_until_ready(out)

    ref = _reference_attention(queries, keys, values)
    assert out.shape == (B, L, H, D), out.shape
    # Tolerance loosened vs 1e-5: approx reciprocal (EUP vrcp) + online-softmax
    # reassociation introduce ~1e-3-level differences, well below attention noise.
    assert jnp.allclose(out, ref, atol=1e-2, rtol=1e-2), (
        float(jnp.max(jnp.abs(out - ref)))
    )

    print("KERNEL_OK")
</pallas_src>

<mosaic_0001>
module attributes {stable_mosaic.version = 11 : i64} {
  func.func @_flash_attention_kernel(%arg0: i32, %arg1: i32, %arg2: i32, %arg3: memref<1x4x8x32xf32, #tpu.memory_space<vmem>>, %arg4: memref<1x4x8x32xf32, #tpu.memory_space<vmem>>, %arg5: memref<1x4x8x32xf32, #tpu.memory_space<vmem>>, %arg6: memref<1x4x8x32xf32, #tpu.memory_space<vmem>>, %arg7: memref<4x8x1xf32, #tpu.memory_space<vmem>>, %arg8: memref<4x8x1xf32, #tpu.memory_space<vmem>>, %arg9: memref<4x8x32xf32, #tpu.memory_space<vmem>>) attributes {dimension_semantics = [#tpu.dimension_semantics<parallel>, #tpu.dimension_semantics<parallel>, #tpu.dimension_semantics<arbitrary>], iteration_bounds = array<i64: 2, 1, 1>, scalar_prefetch = 0 : i64, scratch_operands = 3 : i64, tpu.core_type = #tpu.core_type<tc>, window_params = [{transform_indices = @transform_0, window_bounds = array<i64: 1, 4, 8, 32>}, {transform_indices = @transform_1, window_bounds = array<i64: 1, 4, 8, 32>}, {transform_indices = @transform_2, window_bounds = array<i64: 1, 4, 8, 32>}, {transform_indices = @transform_3, window_bounds = array<i64: 1, 4, 8, 32>}]} {
    %c0_i32 = arith.constant 0 : i32
    %0 = arith.cmpi eq, %arg2, %c0_i32 : i32
    %1 = arith.extui %0 : i1 to i32
    %c0_i32_0 = arith.constant 0 : i32
    %2 = arith.cmpi ne, %1, %c0_i32_0 : i32
    scf.if %2 {
      %cst_36 = arith.constant 0xFF800000 : f32
      %37 = vector.broadcast %cst_36 : f32 to vector<4x8x1xf32>
      %c0_37 = arith.constant 0 : index
      %c0_38 = arith.constant 0 : index
      %c0_39 = arith.constant 0 : index
      %38 = vector.load %arg7[%c0_37, %c0_38, %c0_39] : memref<4x8x1xf32, #tpu.memory_space<vmem>>, vector<4x8x1xf32>
      tpu.vector_store %arg7[%c0_37, %c0_38, %c0_39], %37 {strides = array<i32>} : memref<4x8x1xf32, #tpu.memory_space<vmem>>, vector<4x8x1xf32>,
      %cst_40 = arith.constant 0.000000e+00 : f32
      %39 = vector.broadcast %cst_40 : f32 to vector<4x8x1xf32>
      %c0_41 = arith.constant 0 : index
      %c0_42 = arith.constant 0 : index
      %c0_43 = arith.constant 0 : index
      %40 = vector.load %arg8[%c0_41, %c0_42, %c0_43] : memref<4x8x1xf32, #tpu.memory_space<vmem>>, vector<4x8x1xf32>
      tpu.vector_store %arg8[%c0_41, %c0_42, %c0_43], %39 {strides = array<i32>} : memref<4x8x1xf32, #tpu.memory_space<vmem>>, vector<4x8x1xf32>,
      %cst_44 = arith.constant 0.000000e+00 : f32
      %41 = vector.broadcast %cst_44 : f32 to vector<4x8x32xf32>
      %c0_45 = arith.constant 0 : index
      %c0_46 = arith.constant 0 : index
      %c0_47 = arith.constant 0 : index
      %42 = vector.load %arg9[%c0_45, %c0_46, %c0_47] : memref<4x8x32xf32, #tpu.memory_space<vmem>>, vector<4x8x32xf32>
      tpu.vector_store %arg9[%c0_45, %c0_46, %c0_47], %41 {strides = array<i32>} : memref<4x8x32xf32, #tpu.memory_space<vmem>>, vector<4x8x32xf32>,
    } else {
    }
    %c0 = arith.constant 0 : index
    %c0_1 = arith.constant 0 : index
    %c0_2 = arith.constant 0 : index
    %c0_3 = arith.constant 0 : index
    %3 = vector.load %arg3[%c0, %c0_1, %c0_2, %c0_3] : memref<1x4x8x32xf32, #tpu.memory_space<vmem>>, vector<1x4x8x32xf32>
    %4 = vector.shape_cast %3 : vector<1x4x8x32xf32> to vector<4x8x32xf32>
    %cst = arith.constant 0.176776692 : f32
    %5 = vector.broadcast %cst : f32 to vector<4x8x32xf32>
    %6 = arith.mulf %4, %5 : vector<4x8x32xf32>
    %c0_4 = arith.constant 0 : index
    %c0_5 = arith.constant 0 : index
    %c0_6 = arith.constant 0 : index
    %c0_7 = arith.constant 0 : index
    %7 = vector.load %arg4[%c0_4, %c0_5, %c0_6, %c0_7] : memref<1x4x8x32xf32, #tpu.memory_space<vmem>>, vector<1x4x8x32xf32>
    %8 = vector.shape_cast %7 : vector<1x4x8x32xf32> to vector<4x8x32xf32>
    %cst_8 = arith.constant dense<0.000000e+00> : vector<4x8x8xf32>
    %9 = tpu.matmul %6, %8, %cst_8 {dimension_numbers = #tpu.dot_dimension_numbers<[2], [2], [1], [1], [0, 0, 0, 1, 1, 1], [0], [0]>} : vector<4x8x32xf32>, vector<4x8x32xf32>, vector<4x8x8xf32> -> vector<4x8x8xf32>
    %c0_9 = arith.constant 0 : index
    %c0_10 = arith.constant 0 : index
    %c0_11 = arith.constant 0 : index
    %10 = vector.load %arg7[%c0_9, %c0_10, %c0_11] : memref<4x8x1xf32, #tpu.memory_space<vmem>>, vector<4x8x1xf32>
    %cst_12 = arith.constant dense<0xFF800000> : vector<4x8xf32>
    %11 = vector.multi_reduction <maximumf>, %9, %cst_12 [2] : vector<4x8x8xf32> to vector<4x8xf32>
    %12 = vector.shape_cast %11 : vector<4x8xf32> to vector<4x8x1xf32>
    %13 = arith.maximumf %10, %12 : vector<4x8x1xf32>
    %14 = arith.subf %10, %13 : vector<4x8x1xf32>
    %15 = math.exp %14 : vector<4x8x1xf32>
    %16 = vector.broadcast %13 : vector<4x8x1xf32> to vector<4x8x8xf32>
    %17 = arith.subf %9, %16 : vector<4x8x8xf32>
    %18 = math.exp %17 : vector<4x8x8xf32>
    %c0_13 = arith.constant 0 : index
    %c0_14 = arith.constant 0 : index
    %c0_15 = arith.constant 0 : index
    %19 = vector.load %arg8[%c0_13, %c0_14, %c0_15] : memref<4x8x1xf32, #tpu.memory_space<vmem>>, vector<4x8x1xf32>
    %20 = arith.mulf %15, %19 : vector<4x8x1xf32>
    %cst_16 = arith.constant dense<0.000000e+00> : vector<4x8xf32>
    %21 = vector.multi_reduction <add>, %18, %cst_16 [2] : vector<4x8x8xf32> to vector<4x8xf32>
    %22 = vector.shape_cast %21 : vector<4x8xf32> to vector<4x8x1xf32>
    %23 = arith.addf %20, %22 : vector<4x8x1xf32>
    %c0_17 = arith.constant 0 : index
    %c0_18 = arith.constant 0 : index
    %c0_19 = arith.constant 0 : index
    %24 = vector.load %arg8[%c0_17, %c0_18, %c0_19] : memref<4x8x1xf32, #tpu.memory_space<vmem>>, vector<4x8x1xf32>
    tpu.vector_store %arg8[%c0_17, %c0_18, %c0_19], %23 {strides = array<i32>} : memref<4x8x1xf32, #tpu.memory_space<vmem>>, vector<4x8x1xf32>,
    %c0_20 = arith.constant 0 : index
    %c0_21 = arith.constant 0 : index
    %c0_22 = arith.constant 0 : index
    %c0_23 = arith.constant 0 : index
    %25 = vector.load %arg5[%c0_20, %c0_21, %c0_22, %c0_23] : memref<1x4x8x32xf32, #tpu.memory_space<vmem>>, vector<1x4x8x32xf32>
    %26 = vector.shape_cast %25 : vector<1x4x8x32xf32> to vector<4x8x32xf32>
    %cst_24 = arith.constant dense<0.000000e+00> : vector<4x8x32xf32>
    %27 = tpu.matmul %18, %26, %cst_24 {dimension_numbers = #tpu.dot_dimension_numbers<[2], [1], [1], [2], [0, 0, 0, 1, 1, 2], [0], [0]>} : vector<4x8x8xf32>, vector<4x8x32xf32>, vector<4x8x32xf32> -> vector<4x8x32xf32>
    %c0_25 = arith.constant 0 : index
    %c0_26 = arith.constant 0 : index
    %c0_27 = arith.constant 0 : index
    %28 = vector.load %arg9[%c0_25, %c0_26, %c0_27] : memref<4x8x32xf32, #tpu.memory_space<vmem>>, vector<4x8x32xf32>
    %29 = vector.broadcast %15 : vector<4x8x1xf32> to vector<4x8x32xf32>
    %30 = arith.mulf %29, %28 : vector<4x8x32xf32>
    %31 = arith.addf %30, %27 : vector<4x8x32xf32>
    %c0_28 = arith.constant 0 : index
    %c0_29 = arith.constant 0 : index
    %c0_30 = arith.constant 0 : index
    %32 = vector.load %arg9[%c0_28, %c0_29, %c0_30] : memref<4x8x32xf32, #tpu.memory_space<vmem>>, vector<4x8x32xf32>
    tpu.vector_store %arg9[%c0_28, %c0_29, %c0_30], %31 {strides = array<i32>} : memref<4x8x32xf32, #tpu.memory_space<vmem>>, vector<4x8x32xf32>,
    %c0_31 = arith.constant 0 : index
    %c0_32 = arith.constant 0 : index
    %c0_33 = arith.constant 0 : index
    %33 = vector.load %arg7[%c0_31, %c0_32, %c0_33] : memref<4x8x1xf32, #tpu.memory_space<vmem>>, vector<4x8x1xf32>
    tpu.vector_store %arg7[%c0_31, %c0_32, %c0_33], %13 {strides = array<i32>} : memref<4x8x1xf32, #tpu.memory_space<vmem>>, vector<4x8x1xf32>,
    %c0_i32_34 = arith.constant 0 : i32
    %34 = arith.cmpi eq, %arg2, %c0_i32_34 : i32
    %35 = arith.extui %34 : i1 to i32
    %c0_i32_35 = arith.constant 0 : i32
    %36 = arith.cmpi ne, %35, %c0_i32_35 : i32
    scf.if %36 {
      %c0_36 = arith.constant 0 : index
      %c0_37 = arith.constant 0 : index
      %c0_38 = arith.constant 0 : index
      %37 = vector.load %arg8[%c0_36, %c0_37, %c0_38] : memref<4x8x1xf32, #tpu.memory_space<vmem>>, vector<4x8x1xf32>
      %38 = tpu.reciprocal %37 {approx = true} : vector<4x8x1xf32> -> vector<4x8x1xf32>
      %c0_39 = arith.constant 0 : index
      %c0_40 = arith.constant 0 : index
      %c0_41 = arith.constant 0 : index
      %39 = vector.load %arg9[%c0_39, %c0_40, %c0_41] : memref<4x8x32xf32, #tpu.memory_space<vmem>>, vector<4x8x32xf32>
      %40 = vector.broadcast %38 : vector<4x8x1xf32> to vector<4x8x32xf32>
      %41 = arith.mulf %39, %40 : vector<4x8x32xf32>
      %c0_42 = arith.constant 0 : index
      %c0_43 = arith.constant 0 : index
      %c0_44 = arith.constant 0 : index
      %c0_45 = arith.constant 0 : index
      %42 = vector.load %arg6[%c0_42, %c0_43, %c0_44, %c0_45] : memref<1x4x8x32xf32, #tpu.memory_space<vmem>>, vector<1x4x8x32xf32>
      %43 = vector.shape_cast %42 : vector<1x4x8x32xf32> to vector<4x8x32xf32>
      %44 = vector.shape_cast %41 : vector<4x8x32xf32> to vector<1x4x8x32xf32>
      tpu.vector_store %arg6[%c0_42, %c0_43, %c0_44, %c0_45], %44 {strides = array<i32>} : memref<1x4x8x32xf32, #tpu.memory_space<vmem>>, vector<1x4x8x32xf32>,
    } else {
    }
    return
  }
  func.func @transform_0(%arg0: i32, %arg1: i32, %arg2: i32) -> (i32, i32, i32, i32) {
    %c0_i32 = arith.constant 0 : i32
    %c0_i32_0 = arith.constant 0 : i32
    %c0_i32_1 = arith.constant 0 : i32
    return %arg0, %c0_i32, %arg1, %c0_i32_0 : i32, i32, i32, i32
  }
  func.func @transform_1(%arg0: i32, %arg1: i32, %arg2: i32) -> (i32, i32, i32, i32) {
    %c0_i32 = arith.constant 0 : i32
    %c0_i32_0 = arith.constant 0 : i32
    %c0_i32_1 = arith.constant 0 : i32
    return %arg0, %c0_i32, %arg2, %c0_i32_0 : i32, i32, i32, i32
  }
  func.func @transform_2(%arg0: i32, %arg1: i32, %arg2: i32) -> (i32, i32, i32, i32) {
    %c0_i32 = arith.constant 0 : i32
    %c0_i32_0 = arith.constant 0 : i32
    %c0_i32_1 = arith.constant 0 : i32
    return %arg0, %c0_i32, %arg2, %c0_i32_0 : i32, i32, i32, i32
  }
  func.func @transform_3(%arg0: i32, %arg1: i32, %arg2: i32) -> (i32, i32, i32, i32) {
    %c0_i32 = arith.constant 0 : i32
    %c0_i32_0 = arith.constant 0 : i32
    %c0_i32_1 = arith.constant 0 : i32
    return %arg0, %c0_i32, %arg1, %c0_i32_0 : i32, i32, i32, i32
  }
}

</mosaic_0001>

<bundles_post_ra>
// kernel: tpu_custom_call.1
= control target key start
LH: loop header
LB: loop body
LE: loop exit
PB: predicated region body
PF: predicated region fallthrough
CT: control target
= control target key end

     0   :  { %s2059_s0 = inlined_call_operand.hbm [shape: f32[2,4,8,32], index: 0, kind: input, shape index: {}]   ;;  %s2060_s1 = inlined_call_operand.hbm [shape: f32[2,4,8,32], index: 1, kind: input, shape index: {}]   ;;  %s2061_s2 = inlined_call_operand.hbm [shape: f32[2,4,8,32], index: 2, kind: input, shape index: {}]   ;;  %s2062_s3 = inlined_call_operand.hbm [shape: f32[2,4,8,32], index: 3, kind: output, shape index: {}]  }
   0x1   :  { %2072 = sst [smem:[#allocation18_spill]] %s2060_s1 }
   0x2   :  { %8 = vsyncpa [#allocation6], 0 }
   0x3   :  { %10 = vsyncpa [#allocation6 + $0x1], 0 }
   0x4   :  { %11 = vsyncpa [#allocation9], 0 }
   0x5   :  { %13 = vsyncpa [#allocation9 + $0x1], 0 }
   0x6   :  { %14 = vsyncpa [#allocation7], 0 }
   0x7   :  { %16 = vsyncpa [#allocation7 + $0x1], 0  ;;  %s1665_s12 = smov 0   ;;  %s1667_s13 = smov 0  }
   0x8   :  { %s1669_s14 = smov 0   ;;  %s1671_s15 = smov 0  }
   0x9   :  { %s1673_s16 = smov 0   ;;  %s1675_s17 = smov 0  }
   0xa LB: > { %2073 = sst [smem:[#allocation15_spill]] %s1627_s16  ;;  %s1696_s18 = sadd.s32 4294967295, %s1631_s17   ;;  %s1631_s17 = sphi %s1675_s17, %s22_s17   ;;  %s1627_s16 = sphi %s1673_s16, %s2096_s16   ;;  %s1623_s15 = sphi %s1671_s15, %s2095_s15   ;;  %s1619_s14 = sphi %s1669_s14, %s2099_s14   ;;  %s1615_s13 = sphi %s1667_s13, %s2098_s13   ;;  %s1611_s12 = sphi %s1665_s12, %s2097_s12  }
   0xb   : > { %s1255_s19 = sadd.s32 4294967294, %s1631_s17   ;;  %s41_s20 = sadd.s32 1, %s1627_s16 }
   0xc   : > { %s50_s21 = sadd.s32 1, %s1619_s14  ;;  %p43_p0 = scmp.ge.s32.totalorder %s41_s20, 2 }
   0xd   : > { %p57_p1 = scmp.ne.s32.totalorder %s1619_s14, %s1615_s13  ;;  %p58_p2 = scmp.eq.s32.totalorder %s1631_s17, 0 }
   0xe   : > { %p63_p3 = scmp.ne.s32.totalorder %s1615_s13, %s1611_s12  ;;  %s2101_s20 = smov (%p43_p0, %s41_s20), 0 }
   0xf   : > { %2074 = sst [smem:[#allocation16_spill]] %s2101_s20  ;;  %p1708_p4 = por %p58_p2, %p57_p1 }
  0x10   : > { %p64_p5 = scmp.eq.s32.totalorder %s1696_s18, 0  ;;  %s45_s23 = ssub.s32 %s1627_s16, %s2101_s20 }
  0x11   : > { %p145_p6 = scmp.eq.s32.totalorder %s1696_s18, 1  ;;  %p48_p7 = scmp.eq.s32.totalorder %s45_s23, 0 }
  0x12   : > { %p1716_p8 = por %p64_p5, %p63_p3  ;;  %p151_p10 = scmp.eq.s32.totalorder %s1255_s19, 1 }
  0x13   : > { %p1720_p9 = por %p145_p6, %p57_p1  ;;  %p1371_p13 = scmp.lt.s32.totalorder %s1631_s17, 2 }
  0x14   : > { %s2076_s24 = scalar_select %p1716_p8, 1, 0 }
  0x15   : > { %s2077_s25 = scalar_select %p1720_p9, 1, 0 }
  0x16   : > { %s1725_s26 = scalar_select %p48_p7, %s1619_s14, %s50_s21  }
  0x17   : > { %p1727_p11 = por %p151_p10, %p63_p3  ;;  %s2065_s28 = sand.u32 1, %s1619_s14  }
  0x18   : > { %2078 = sst [smem:[#allocation17_spill]] %s1725_s26  ;;  %s1736_s29 = sshll.u32 %s2065_s28, 5 }
  0x19   : > { %s2079_s27 = scalar_select %p1727_p11, 1, 0 }
  0x1a   : > { %s1739_s30 = sshll.u32 %s1627_s16, 9  ;;  %p1743_p0 = pnand %p1371_p13, %p1708_p4 }
  0x1b   : > { %s193_s5 = sand.u32 1, %s1631_s17   ;;  %s2081_s1 = sld [smem:[#allocation18_spill]] }
  0x1c   : > { %s197_s9 = scalar_lea.vmem [#allocation8], %s1736_s29  ;;  %s1759_s11 = scalar_lea.sflag [#allocation9], %s193_s5 }
  0x1d   : > { %s205_s10 = sshll.u32 %s197_s9, 4  ;;  %p1765_p4 = pneg %p1743_p0  ;;  %s1756_s10 = int_to_ptr.vmem [resolvable:$true] %s205_s10 }
  0x21   : > { %s1752_s8 = scalar_lea.hbm %s2081_s1, %s1739_s30  ;;  %s1460_s6 = scalar_lea.hbm %s2081_s1, 1024 }
  0x22   : > { %s1455_s19 = scalar_lea.hbm %s1752_s8, 512  ;;  %p1461_p7 = scmp.lt.u32.totalorder %s1752_s8, %s2081_s1 }
  0x23   : > { %p1456_p3 = scmp.ne.s32.totalorder %s1752_s8, %s1455_s19  ;;  %p1462_p10 = scmp.lt.u32.totalorder %s1460_s6, %s1455_s19 }
  0x24   : > { %p1464_p12 = scmp.lt.u32.totalorder %s1455_s19, %s1752_s8 }
  0x25   : > { %p1458_p5 = pnand %p1765_p4, %p1456_p3  ;;  %p1463_p13 = por %p1462_p10, %p1461_p7 }
  0x27   : > { %p1459_p6 = pneg %p1458_p5  ;;  %p1465_p1 = por %p1464_p12, %p1463_p13 }
  0x29   : > { %p1466_p2 = pnand %p1465_p1, %p1459_p6 }
  0x2b   : > { %1469 = shalt.err (!%p1466_p2)
}
  0x2c   : > { %s1470_s5 = scalar_lea.vmem %s1756_s10, 512  ;;  %s1633_s22 = smov [#allocation8]  }
  0x2d   : > { %p1471_p3 = scmp.ne.s32.totalorder %s1756_s10, %s1470_s5  ;;  %s1475_s23 = sshll.u32 %s1633_s22, 4  ;;  %s1476_s23 = int_to_ptr.vmem [resolvable:$false] %s1475_s23 }
  0x2e   : > { %s1477_s7 = scalar_lea.vmem %s1476_s23, 1024  ;;  %p1478_p9 = scmp.lt.s32.totalorder %s1756_s10, %s1476_s23 }
  0x2f   : > { %p1473_p5 = pnand %p1471_p3, %p1765_p4  ;;  %p1479_p8 = scmp.lt.s32.totalorder %s1477_s7, %s1470_s5 }
  0x31   : > { %p1474_p11 = pneg %p1473_p5  ;;  %p1480_p7 = por %p1479_p8, %p1478_p9 }
  0x33   : > { %p1481_p10 = pnand %p1480_p7, %p1474_p11 }
  0x35   : > { %1484 = shalt.err (!%p1481_p10)
}
  0x36   : > { %s2066_s19 = smov 128   ;;  %s2068_s6 = smov 8  }
  0x37   : > { %1363 = dma.hbm_to_vmem [thread:$0]  (!%p1743_p0), %s1752_s8, 512, %s1756_s10, %s1759_s11, %s2066_s19, %s2066_s19, %s2068_s6  }
  0x38   : > { %p2083_p8 = scmp.lt.s32.totalorder %s1631_s17, 3  ;;  %p2084_p9 = scmp.ge.s32.totalorder %s1631_s17, 1 }
  0x39   : > { %s1804_s23 = scalar_lea.hbm %s2059_s0, %s1739_s30  ;;  %s175_s7 = scalar_lea.vmem [#allocation5], %s1736_s29 }
  0x3a   : > { %p1796_p11 = pnand %p2084_p9, %p2083_p8  ;;  %s183_s28 = sshll.u32 %s175_s7, 4  ;;  %s1807_s28 = int_to_ptr.vmem [resolvable:$true] %s183_s28 }
  0x3b   : > { %s1813_s19 = scalar_lea.hbm %s2061_s2, %s1739_s30  ;;  %s2086_s6 = sand.u32 1, %s1619_s14  }
  0x3c   : > { %s2085_s9 = scalar_select %p1796_p11, 1, 0 }
  0x3d   : > { %s1817_s1 = scalar_lea.sflag [#allocation6], %s2086_s6  ;;  %s1485_s20 = scalar_lea.hbm %s1804_s23, 512 }
  0x3e   : > { %p1486_p12 = scmp.ne.s32.totalorder %s1804_s23, %s1485_s20  ;;  %s1490_s16 = scalar_lea.hbm %s2059_s0, 1024 }
  0x3f   : > { %p1491_p6 = scmp.lt.u32.totalorder %s1804_s23, %s2059_s0  ;;  %p1492_p13 = scmp.lt.u32.totalorder %s1490_s16, %s1485_s20 }
  0x40   : > { %p1488_p1 = pnand %p1486_p12, %p1765_p4  ;;  %p1494_p5 = scmp.lt.u32.totalorder %s1485_s20, %s1804_s23 }
  0x41   : > { %p1493_p3 = por %p1492_p13, %p1491_p6 }
  0x42   : > { %p1489_p2 = pneg %p1488_p1 }
  0x43   : > { %p1495_p7 = por %p1494_p5, %p1493_p3 }
  0x45   : > { %p1496_p10 = pnand %p1495_p7, %p1489_p2 }
  0x47   : > { %1499 = shalt.err (!%p1496_p10)
}
  0x48   : > { %s1500_s30 = scalar_lea.vmem %s1807_s28, 512  ;;  %s1636_s6 = smov [#allocation5]  }
  0x49   : > { %p1501_p8 = scmp.ne.s32.totalorder %s1807_s28, %s1500_s30  ;;  %s1505_s8 = sshll.u32 %s1636_s6, 4  ;;  %s1506_s8 = int_to_ptr.vmem [resolvable:$false] %s1505_s8 }
  0x4a   : > { %s1507_s26 = scalar_lea.vmem %s1506_s8, 1024  ;;  %p1508_p1 = scmp.lt.s32.totalorder %s1807_s28, %s1506_s8 }
  0x4b   : > { %p1503_p9 = pnand %p1501_p8, %p1765_p4  ;;  %p1509_p11 = scmp.lt.s32.totalorder %s1507_s26, %s1500_s30 }
  0x4d   : > { %p1504_p12 = pneg %p1503_p9  ;;  %p1510_p6 = por %p1509_p11, %p1508_p1 }
  0x4f   : > { %p1511_p13 = pnand %p1510_p6, %p1504_p12 }
  0x51   : > { %1514 = shalt.err (!%p1511_p13)
}
  0x52   : > { %s2087_s16 = smov 8   ;;  %s2088_s20 = smov 128  }
  0x53   : > { %1360 = dma.hbm_to_vmem [thread:$0]  (!%p1743_p0), %s1804_s23, 512, %s1807_s28, %s1817_s1, %s2088_s20, %s2088_s20, %s2087_s16  }
  0x54   : > { %s219_s10 = scalar_lea.vmem [#allocation10], %s1736_s29  ;;  %s1515_s22 = scalar_lea.hbm %s1813_s19, 512 }
  0x55   : > { %s227_s5 = sshll.u32 %s219_s10, 4  ;;  %p1516_p11 = scmp.ne.s32.totalorder %s1813_s19, %s1515_s22  ;;  %s1845_s5 = int_to_ptr.vmem [resolvable:$true] %s227_s5 }
  0x56   : > { %s1520_s6 = scalar_lea.hbm %s2061_s2, 1024  ;;  %p1521_p5 = scmp.lt.u32.totalorder %s1813_s19, %s2061_s2 }
  0x57   : > { %p1518_p2 = pnand %p1516_p11, %p1765_p4  ;;  %p1522_p7 = scmp.lt.u32.totalorder %s1520_s6, %s1515_s22 }
  0x58   : > { %p1524_p8 = scmp.lt.u32.totalorder %s1515_s22, %s1813_s19 }
  0x59   : > { %p1519_p3 = pneg %p1518_p2  ;;  %p1523_p10 = por %p1522_p7, %p1521_p5 }
  0x5b   : > { %p1525_p9 = por %p1524_p8, %p1523_p10 }
  0x5d   : > { %p1526_p12 = pnand %p1525_p9, %p1519_p3 }
  0x5f   : > { %1529 = shalt.err (!%p1526_p12)
}
  0x60   : > { %s1530_s1 = scalar_lea.vmem %s1845_s5, 512  ;;  %s1637_s28 = smov [#allocation10]  }
  0x61   : > { %p1531_p1 = scmp.ne.s32.totalorder %s1845_s5, %s1530_s1  ;;  %s1535_s29 = sshll.u32 %s1637_s28, 4  ;;  %s1536_s29 = int_to_ptr.vmem [resolvable:$false] %s1535_s29 }
  0x62   : > { %s1537_s23 = scalar_lea.vmem %s1536_s29, 1024  ;;  %p1538_p11 = scmp.lt.s32.totalorder %s1845_s5, %s1536_s29 }
  0x63   : > { %p1533_p6 = pnand %p1531_p1, %p1765_p4  ;;  %p1539_p2 = scmp.lt.s32.totalorder %s1537_s23, %s1530_s1 }
  0x65   : > { %p1534_p13 = pneg %p1533_p6  ;;  %p1540_p5 = por %p1539_p2, %p1538_p11 }
  0x67   : > { %p1541_p7 = pnand %p1540_p5, %p1534_p13 }
  0x69   : > { %1544 = shalt.err (!%p1541_p7)
}
  0x6a   : > { %1366 = dma.hbm_to_vmem [thread:$0]  (!%p1743_p0), %s1813_s19, 512, %s1845_s5, %s1759_s11, %s2088_s20, %s2088_s20, %s2087_s16  }
  0x6b   : > { %p2089_p4 = scmp.ne.s32.totalorder %s2085_s9, 0 }
  0x6c   : > { %s1875_s21 = sand.u32 (!%p2089_p4), 1, %s1615_s13   ;;  %p2090_p3 = scmp.ne.s32.totalorder (!%p2089_p4), %s2076_s24, 0 }
  0x6d   : > { %239 = sbr.rel (%p2089_p4) target bundleno = 947 (0x3b3), region = 32  ;;  %s1878_s10 = sshll.u32 (!%p2089_p4), %s1875_s21, 5 }
  0x6e   : > { %s242_s4 = scalar_lea.sflag (!%p2089_p4), [#allocation6], %s1875_s21  ;;  %s1882_s22 = scalar_lea.vmem (!%p2089_p4), [#allocation5], %s1878_s10 }
  0x74   : > { %1598 = dma.done.wait (%p2090_p3), %s242_s4, 512  }
  0x75   : > { %1600 = vsyncadd (%p2090_p3), %s242_s4, 4294966784  ;;  %s250_s11 = sand.u32 1, %s1696_s18   ;;  %s254_s9 = scalar_lea.vmem [#allocation8], %s1878_s10 }
  0x76   : > { %s251_s19 = scalar_lea.sflag [#allocation9], %s250_s11 }
  0x77   : > { %1602 = dma.done.wait (%p2090_p3), %s251_s19, 1024  }
  0x78   : > { %1604 = vsyncadd (%p2090_p3), %s251_s19, 4294966272  ;;  %vm309_vm0 = vcmask 261120   ;;  %v1638_v0 = vmov 0.0   ;;  %vm1639_vm1 = vmmov 0   ;;  %v322_v1 = vld [vmem:[%s254_s9] sm:$0xff]  ;;  %v323_v3 = vld [vmem:[%s254_s9 + $0x8] sm:$0xff] }
  0x79   : > { %1309 = vmatprep.subr.mxu0 %v1638_v0  ;;  %310 = vst.msk [vmem:[#allocation4] sm:$0xff] %vm309_vm0, %v1638_v0  ;;  %311 = vst.msk [vmem:[#allocation4 + $0x8] sm:$0xff] %vm309_vm0, %v1638_v0  ;;  %1311 = vmatprep.mubr.msk.f32.mxu0 %vm1639_vm1, %v1638_v0  ;;  %v314_v2 = vld [vmem:[%s1882_s22] sm:$0xff]  ;;  %v315_v5 = vld [vmem:[%s1882_s22 + $0x8] sm:$0xff]  ;;  %vm300_vm2 = vcmask 7168   ;;  %v1640_v13 = vmov -inf  }
  0x7a   : > { %312 = vst.msk [vmem:[#allocation4 + $0x10] sm:$0xff] %vm309_vm0, %v1638_v0  ;;  %313 = vst.msk [vmem:[#allocation4 + $0x18] sm:$0xff] %vm309_vm0, %v1638_v0  ;;  %1314 = vmatprep.subr.mxu1 %v1638_v0  ;;  %1316 = vmatprep.mubr.msk.f32.mxu1 %vm1639_vm1, %v1638_v0  ;;  %v318_v4 = vmul.f32 0.17677669, %v314_v2  ;;  %v316_v6 = vld [vmem:[%s1882_s22 + $0x10] sm:$0xff]  ;;  %v317_v9 = vld [vmem:[%s1882_s22 + $0x18] sm:$0xff] }
  0x7b   : > { %1310 = vmatpush3.xpose.msk.msra.mxu0 %vm309_vm0, %v322_v1  ;;  %1315 = vmatpush3.xpose.msk.msra.mxu1 %vm309_vm0, %v323_v3  ;;  %v319_v7 = vmul.f32 0.17677669, %v315_v5  ;;  %v324_v8 = vld [vmem:[%s254_s9 + $0x10] sm:$0xff]  ;;  %v325_v10 = vld [vmem:[%s254_s9 + $0x18] sm:$0xff]  ;;  %v320_v11 = vmul.f32 0.17677669, %v316_v6 }
  0x7c   : > { %1319 = vmatprep.subr.mxu0 %v1638_v0  ;;  %1324 = vmatprep.subr.mxu1 %v1638_v0  ;;  %v321_v12 = vmul.f32 0.17677669, %v317_v9  ;;  %301 = vst.msk [vmem:[#allocation2] sm:$0xff] %vm300_vm2, %v1640_v13  ;;  %302 = vst.msk [vmem:[#allocation2 + $0x8] sm:$0xff] %vm300_vm2, %v1640_v13  ;;  %vm635_vm3 = vcmask 64512   ;;  %v1641_v26 = vmov 0  }
  0x7d   : > { %303 = vst.msk [vmem:[#allocation2 + $0x10] sm:$0xff] %vm300_vm2, %v1640_v13  ;;  %304 = vst.msk [vmem:[#allocation2 + $0x18] sm:$0xff] %vm300_vm2, %v1640_v13  ;;  %1429 = vset.pattern.permute.xlu0 %v1641_v26  ;;  %1430 = vset.pattern.permute.xlu1 %v1641_v26  ;;  %s263_s18 = scalar_lea.vmem [#allocation10], %s1878_s10  ;;  %s295_s24 = scalar_lea.vmem [#allocation11], %s1878_s10 }
  0x7e   : > { %1312 = vmatmul.mubr.msk.f32.vlgmr.msra.gmra.mrb[0].mxu0 %vm309_vm0, %v318_v4  ;;  %1317 = vmatmul.mubr.msk.f32.vlgmr.msra.gmra.mrb[0].mxu1 %vm309_vm0, %v319_v7  ;;  %305 = vst.msk [vmem:[#allocation3] sm:$0xff] %vm300_vm2, %v1638_v0  ;;  %306 = vst.msk [vmem:[#allocation3 + $0x8] sm:$0xff] %vm300_vm2, %v1638_v0  ;;  %v725_v43 = vld [vmem:[%s263_s18] sm:$0xff]  ;;  %v726_v44 = vld [vmem:[%s263_s18 + $0x8] sm:$0xff]  ;;  %s1119_s16 = sshll.u32 %s295_s24, 4  ;;  %s1292_s20 = sshll.u32 %s1623_s15, 9  ;;  %s2003_s16 = int_to_ptr.vmem [resolvable:$true] %s1119_s16 }
  0x7f   : > { %1320 = vmatpush3.xpose.msk.msra.mxu0 %vm309_vm0, %v324_v8  ;;  %1321 = vmatprep.mubr.msk.f32.mxu0 %vm1639_vm1, %v1638_v0  ;;  %307 = vst.msk [vmem:[#allocation3 + $0x10] sm:$0xff] %vm300_vm2, %v1638_v0  ;;  %308 = vst.msk [vmem:[#allocation3 + $0x18] sm:$0xff] %vm300_vm2, %v1638_v0  ;;  %v727_v56 = vld [vmem:[%s263_s18 + $0x10] sm:$0xff]  ;;  %v728_v60 = vld [vmem:[%s263_s18 + $0x18] sm:$0xff]  ;;  %s2009_s30 = scalar_lea.hbm %s2062_s3, %s1292_s20  ;;  %s1105_s6 = scalar_lea.sflag [#allocation7], %s1875_s21 }
  0x80   : > { %1325 = vmatpush3.xpose.msk.msra.mxu1 %vm309_vm0, %v325_v10  ;;  %1326 = vmatprep.mubr.msk.f32.mxu1 %vm1639_vm1, %v1638_v0  ;;  %s1545_s8 = scalar_lea.vmem %s2003_s16, 512  ;;  %p2091_p10 = scmp.ne.s32.totalorder %s2077_s25, 0 }
  0x81   : > { %1329 = vmatprep.subr.mxu0 %v1638_v0  ;;  %1334 = vmatprep.subr.mxu1 %v1638_v0  ;;  %p1546_p0 = scmp.ne.s32.totalorder %s2003_s16, %s1545_s8  ;;  %s1642_s15 = smov [#allocation11]  }
  0x82   : > { %1322 = vmatmul.mubr.msk.f32.vlgmr.msra.gmra.mrb[2].mxu0 %vm309_vm0, %v320_v11  ;;  %s1549_s26 = sshll.u32 %s1642_s15, 4  ;;  %s1550_s26 = int_to_ptr.vmem [resolvable:$false] %s1549_s26 }
  0x83   : > { %1327 = vmatmul.mubr.msk.f32.vlgmr.msra.gmra.mrb[2].mxu1 %vm309_vm0, %v321_v12  ;;  %1331 = vmatprep.mubr.msk.f32.mxu0 %vm1639_vm1, %v1638_v0  ;;  %v1948_v27 = vld [vmem:[#allocation2] sm:$0xff]  ;;  %v1953_v30 = vld [vmem:[#allocation2 + $0x8] sm:$0xff]  ;;  %p1547_p8 = pnand %p1546_p0, %p2091_p10  ;;  %s1551_s1 = scalar_lea.vmem %s1550_s26, 1024 }
  0x84   : > { %1336 = vmatprep.mubr.msk.f32.mxu1 %vm1639_vm1, %v1638_v0  ;;  %v1955_v31 = vld [vmem:[#allocation2 + $0x10] sm:$0xff]  ;;  %v1964_v37 = vld [vmem:[#allocation2 + $0x18] sm:$0xff]  ;;  %1330 = vmatpush3.msra.mxu0 %v725_v43  ;;  %p1552_p12 = scmp.lt.s32.totalorder %s2003_s16, %s1550_s26  ;;  %p1553_p1 = scmp.lt.s32.totalorder %s1551_s1, %s1545_s8 }
  0x85   : > { %1339 = vmatprep.subr.mxu0 %v1638_v0  ;;  %1335 = vmatpush3.msra.mxu1 %v726_v44  ;;  %v696_v11 = vld [vmem:[#allocation3] sm:$0xff]  ;;  %p1548_p9 = pneg %p1547_p8 }
  0x86   : > { %1344 = vmatprep.subr.mxu1 %v1638_v0  ;;  %p1554_p6 = por %p1553_p1, %p1552_p12 }
  0x88   : > { %p1555_p13 = pnand %p1554_p6, %p1548_p9 }
 0x151   : > { %v399_v14 = vpop.f32.mrb[0].mxu0  ;;  %v475_v15 = vpop.f32.mrb[0].mxu1 }
 0x152   : > { %v1313_v16 = vpop.f32.mrb[1].mxu0  ;;  %v636_v17 = vsel %vm635_vm3, %v399_v14, -inf  ;;  %v1318_v18 = vpop.f32.mrb[1].mxu1  ;;  %v639_v19 = vsel %vm635_vm3, %v475_v15, -inf }
 0x153   : > { %637 = vmax.xlane.f32.xlu0 %v636_v17  ;;  %v698_v18 = vld [vmem:[#allocation3 + $0x10] sm:$0xff] }
 0x155   : > { %v551_v20 = vpop.f32.mrb[2].mxu0 }
 0x156   : > { %v1323_v21 = vpop.f32.mrb[3].mxu0  ;;  %v642_v22 = vsel %vm635_vm3, %v551_v20, -inf  ;;  %v627_v23 = vpop.f32.mrb[2].mxu1 }
 0x157   : > { %640 = vmax.xlane.f32.xlu0 %v639_v19  ;;  %643 = vmax.xlane.f32.xlu1 %v642_v22  ;;  %v1328_v24 = vpop.f32.mrb[3].mxu1  ;;  %v645_v25 = vsel %vm635_vm3, %v627_v23, -inf  ;;  %v699_v22 = vld [vmem:[#allocation3 + $0x18] sm:$0xff] }
 0x15b   : > { %646 = vmax.xlane.f32.xlu1 %v645_v25 }
 0x1e0   : > { %v638_v28 = vpop.xlane.xlu0 %637 }
 0x1e1   : > { %v1951_v29 = vmax.f32 %v1948_v27, %v638_v28 }
 0x1e3   : > { %v652_v32 = vsub.f32 %v1948_v27, %v1951_v29  ;;  %1057 = vst.msk [vmem:[#allocation2] sm:$0xff] %vm300_vm2, %v1951_v29  ;;  %666 = vperm.xlu0 %1429, %v1951_v29  }
 0x1e4   : > { %v641_v33 = vpop.xlane.xlu0 %640  ;;  %v644_v34 = vpop.xlane.xlu1 %643 }
 0x1e5   : > { %v649_v35 = vmax.f32 %v1953_v30, %v641_v33  ;;  %v650_v36 = vmax.f32 %v1955_v31, %v644_v34  ;;  %v656_v5 = vmul.f32 1.442695, %v652_v32 }
 0x1e7   : > { %v653_v38 = vsub.f32 %v1953_v30, %v649_v35  ;;  %1058 = vst.msk [vmem:[#allocation2 + $0x8] sm:$0xff] %vm300_vm2, %v649_v35  ;;  %671 = vperm.xlu1 %1430, %v649_v35   ;;  %v654_v39 = vsub.f32 %v1955_v31, %v650_v36  ;;  %1059 = vst.msk [vmem:[#allocation2 + $0x10] sm:$0xff] %vm300_vm2, %v650_v36  ;;  %v1021_v35 = vld [vmem:[#allocation4] sm:$0xff] }
 0x1e8   : > { %v647_v40 = vpop.xlane.xlu1 %646 }
 0x1e9   : > { %v651_v41 = vmax.f32 %v1964_v37, %v647_v40  ;;  %v658_v3 = vmul.f32 1.442695, %v653_v38  ;;  %v1022_v38 = vld [vmem:[#allocation4 + $0x8] sm:$0xff] }
 0x1eb   : > { %676 = vperm.xlu1 %1430, %v650_v36   ;;  %v655_v42 = vsub.f32 %v1964_v37, %v651_v41  ;;  %1060 = vst.msk [vmem:[#allocation2 + $0x18] sm:$0xff] %vm300_vm2, %v651_v41 }
 0x1ed   : > { %v662_v6 = vmul.f32 1.442695, %v655_v42 }
 0x1ef   : > { %681 = vperm.xlu1 %1430, %v651_v41  }
 0x262   : > { %v667_v45 = vpop.permute.xlu0 %666 }
 0x263   : > { %v684_v46 = vsub.f32 %v399_v14, %v667_v45  ;;  %v697_v14 = vld [vmem:[#allocation3 + $0x8] sm:$0xff]  ;;  %v1023_v45 = vld [vmem:[#allocation4 + $0x10] sm:$0xff] }
 0x265   : > { %v688_v47 = vmul.f32 1.442695, %v684_v46 }
 0x266   : > { %v672_v48 = vpop.permute.xlu1 %671 }
 0x267   : > { %1431 = vpow2.f32 %v688_v47  ;;  %v685_v49 = vsub.f32 %v475_v15, %v672_v48 }
 0x269   : > { %v690_v50 = vmul.f32 1.442695, %v685_v49 }
 0x26a   : > { %v677_v51 = vpop.permute.xlu1 %676 }
 0x26b   : > { %1433 = vpow2.f32 %v690_v50  ;;  %v686_v52 = vsub.f32 %v551_v20, %v677_v51  ;;  %v1024_v50 = vld [vmem:[#allocation4 + $0x18] sm:$0xff] }
 0x26d   : > { %v692_v53 = vmul.f32 1.442695, %v686_v52 }
 0x26e   : > { %v682_v54 = vpop.permute.xlu1 %681 }
 0x26f   : > { %1435 = vpow2.f32 %v692_v53  ;;  %v687_v55 = vsub.f32 %v627_v23, %v682_v54 }
 0x271   : > { %v1432_v57 = vpop.eup %1431  ;;  %v694_v58 = vmul.f32 1.442695, %v687_v55 }
 0x272   : > { %1332 = vmatmul.mubr.msk.f32.vlgmr.msra.gmra.mrb[4].mxu0 %vm635_vm3, %v1432_v57  ;;  %v704_v59 = vsel %vm635_vm3, %v1432_v57, 0.0 }
 0x273   : > { %1437 = vpow2.f32 %v694_v58  ;;  %705 = vadd.xlane.f32.xlu1 %v704_v59  ;;  %1340 = vmatpush3.msra.mxu0 %v727_v56 }
 0x274   : > { %1341 = vmatprep.mubr.msk.f32.mxu0 %vm1639_vm1, %v1638_v0  ;;  %1439 = vpow2.f32 %v658_v3 }
 0x275   : > { %v1434_v61 = vpop.eup %1433  ;;  %1441 = vpow2.f32 %v656_v5 }
 0x276   : > { %1337 = vmatmul.mubr.msk.f32.vlgmr.msra.gmra.mrb[4].mxu1 %vm635_vm3, %v1434_v61  ;;  %v707_v62 = vsel %vm635_vm3, %v1434_v61, 0.0 }
 0x277   : > { %708 = vadd.xlane.f32.xlu0 %v707_v62  ;;  %1345 = vmatpush3.msra.mxu1 %v728_v60 }
 0x278   : > { %1346 = vmatprep.mubr.msk.f32.mxu1 %vm1639_vm1, %v1638_v0  ;;  %v660_v0 = vmul.f32 1.442695, %v654_v39 }
 0x279   : > { %v1436_v63 = vpop.eup %1435 }
 0x27a   : > { %1342 = vmatmul.mubr.msk.f32.vlgmr.msra.gmra.mrb[6].mxu0 %vm635_vm3, %v1436_v63  ;;  %v710_v1 = vsel %vm635_vm3, %v1436_v63, 0.0  ;;  %1443 = vpow2.f32 %v660_v0 }
 0x27b   : > { %711 = vadd.xlane.f32.xlu1 %v710_v1  ;;  %1445 = vpow2.f32 %v662_v6 }
 0x27d   : > { %v1438_v2 = vpop.eup %1437 }
 0x27e   : > { %1347 = vmatmul.mubr.msk.f32.vlgmr.msra.gmra.mrb[6].mxu1 %vm635_vm3, %v1438_v2  ;;  %v713_v4 = vsel %vm635_vm3, %v1438_v2, 0.0  ;;  %v1440_v7 = vpop.eup %1439 }
 0x27f   : > { %714 = vadd.xlane.f32.xlu1 %v713_v4  ;;  %v1442_v8 = vpop.eup %1441  ;;  %v701_v16 = vmul.f32 %v1440_v7, %v697_v14 }
 0x280   : > { %v700_v12 = vmul.f32 %v1442_v8, %v696_v11 }
 0x284   : > { %v1444_v9 = vpop.eup %1443 }
 0x285   : > { %v1446_v10 = vpop.eup %1445  ;;  %v702_v20 = vmul.f32 %v1444_v9, %v698_v18 }
 0x286   : > { %v703_v25 = vmul.f32 %v1446_v10, %v699_v22 }
 0x28d   : > { %1032 = vperm.xlu0 %1429, %v1440_v7  }
 0x290   : > { %1027 = vperm.xlu1 %1430, %v1442_v8  }
 0x294   : > { %1037 = vperm.xlu1 %1430, %v1444_v9  }
 0x298   : > { %1042 = vperm.xlu1 %1430, %v1446_v10  }
 0x300   : > { %v706_v13 = vpop.xlane.xlu1 %705 }
 0x301   : > { %v716_v15 = vadd.f32 %v706_v13, %v700_v12 }
 0x303   : > { %721 = vst.msk [vmem:[#allocation3] sm:$0xff] %vm300_vm2, %v716_v15 }
 0x304   : > { %v709_v17 = vpop.xlane.xlu0 %708 }
 0x305   : > { %v717_v19 = vadd.f32 %v709_v17, %v701_v16 }
 0x307   : > { %722 = vst.msk [vmem:[#allocation3 + $0x8] sm:$0xff] %vm300_vm2, %v717_v19 }
 0x308   : > { %v712_v21 = vpop.xlane.xlu1 %711 }
 0x309   : > { %v718_v23 = vadd.f32 %v712_v21, %v702_v20 }
 0x30a   : > { %v1064_v24 = vld [vmem:[#allocation3] sm:$0xff] }
 0x30b   : > { %723 = vst.msk [vmem:[#allocation3 + $0x10] sm:$0xff] %vm300_vm2, %v718_v23  ;;  %1447 = vrcp.f32 %v1064_v24 }
 0x30c   : > { %v715_v26 = vpop.xlane.xlu1 %714  ;;  %v1033_v39 = vpop.permute.xlu0 %1032 }
 0x30d   : > { %v719_v27 = vadd.f32 %v715_v26, %v703_v25  ;;  %v1046_v44 = vmul.f32 %v1033_v39, %v1022_v38 }
 0x30e   : > { %v1065_v28 = vld [vmem:[#allocation3 + $0x8] sm:$0xff] }
 0x30f   : > { %724 = vst.msk [vmem:[#allocation3 + $0x18] sm:$0xff] %vm300_vm2, %v719_v27  ;;  %1449 = vrcp.f32 %v1065_v28 }
 0x310   : > { %v1028_v36 = vpop.permute.xlu1 %1027 }
 0x311   : > { %v1045_v37 = vmul.f32 %v1028_v36, %v1021_v35 }
 0x312   : > { %v1066_v29 = vld [vmem:[#allocation3 + $0x10] sm:$0xff] }
 0x313   : > { %1451 = vrcp.f32 %v1066_v29 }
 0x314   : > { %v1038_v43 = vpop.permute.xlu1 %1037 }
 0x315   : > { %v1448_v30 = vpop.eup %1447  ;;  %v1047_v49 = vmul.f32 %v1038_v43, %v1023_v45 }
 0x316   : > { %1078 = vperm.xlu1 %1430, %v1448_v30   ;;  %v1067_v31 = vld [vmem:[#allocation3 + $0x18] sm:$0xff] }
 0x317   : > { %1453 = vrcp.f32 %v1067_v31 }
 0x318   : > { %v1043_v51 = vpop.permute.xlu1 %1042 }
 0x319   : > { %v1450_v32 = vpop.eup %1449  ;;  %v1048_v55 = vmul.f32 %v1043_v51, %v1024_v50 }
 0x31a   : > { %1083 = vperm.xlu0 %1429, %v1450_v32  }
 0x31d   : > { %v1452_v33 = vpop.eup %1451 }
 0x31e   : > { %1088 = vperm.xlu1 %1430, %v1452_v33  }
 0x321   : > { %v1454_v34 = vpop.eup %1453 }
 0x322   : > { %1093 = vperm.xlu0 %1429, %v1454_v34  }
 0x345   : > { %v798_v40 = vpop.f32.mrb[4].mxu0 }
 0x346   : > { %v1049_v41 = vadd.f32 %v1045_v37, %v798_v40  ;;  %v1333_v42 = vpop.f32.mrb[5].mxu0 }
 0x348   : > { %1053 = vst.msk [vmem:[#allocation4] sm:$0xff] %vm309_vm0, %v1049_v41 }
 0x349   : > { %v871_v46 = vpop.f32.mrb[4].mxu1 }
 0x34a   : > { %v1050_v47 = vadd.f32 %v1046_v44, %v871_v46  ;;  %v1338_v48 = vpop.f32.mrb[5].mxu1 }
 0x34c   : > { %1054 = vst.msk [vmem:[#allocation4 + $0x8] sm:$0xff] %vm309_vm0, %v1050_v47 }
 0x34d   : > { %v944_v52 = vpop.f32.mrb[6].mxu0 }
 0x34e   : > { %v1051_v53 = vadd.f32 %v1047_v49, %v944_v52  ;;  %v1343_v54 = vpop.f32.mrb[7].mxu0 }
 0x34f   : > { %v1072_v59 = vld [vmem:[#allocation4] sm:$0xff] }
 0x350   : > { %1055 = vst.msk [vmem:[#allocation4 + $0x10] sm:$0xff] %vm309_vm0, %v1051_v53 }
 0x351   : > { %v1017_v56 = vpop.f32.mrb[6].mxu1 }
 0x352   : > { %v1052_v57 = vadd.f32 %v1048_v55, %v1017_v56  ;;  %v1348_v58 = vpop.f32.mrb[7].mxu1 }
 0x353   : > { %v1073_v62 = vld [vmem:[#allocation4 + $0x8] sm:$0xff] }
 0x354   : > { %1056 = vst.msk [vmem:[#allocation4 + $0x18] sm:$0xff] %vm309_vm0, %v1052_v57 }
 0x357   : > { %v1074_v2 = vld [vmem:[#allocation4 + $0x10] sm:$0xff] }
 0x35b   : > { %v1075_v0 = vld [vmem:[#allocation4 + $0x18] sm:$0xff] }
 0x395   : > { %v1079_v60 = vpop.permute.xlu1 %1078 }
 0x396   : > { %v1096_v61 = vmul.f32 %v1079_v60, %v1072_v59 }
 0x398   : > { %1100 = vst.msk [vmem:[%s295_s24] sm:$0xff] %vm309_vm0, %v1096_v61 }
 0x399   : > { %v1084_v63 = vpop.permute.xlu0 %1083 }
 0x39a   : > { %v1097_v1 = vmul.f32 %v1084_v63, %v1073_v62 }
 0x39c   : > { %1101 = vst.msk [vmem:[%s295_s24 + $0x8] sm:$0xff] %vm309_vm0, %v1097_v1 }
 0x39d   : > { %v1089_v3 = vpop.permute.xlu1 %1088 }
 0x39e   : > { %v1098_v4 = vmul.f32 %v1089_v3, %v1074_v2 }
 0x3a0   : > { %1102 = vst.msk [vmem:[%s295_s24 + $0x10] sm:$0xff] %vm309_vm0, %v1098_v4 }
 0x3a1   : > { %v1094_v5 = vpop.permute.xlu0 %1093 }
 0x3a2   : > { %v1099_v6 = vmul.f32 %v1094_v5, %v1075_v0 }
 0x3a4   : > { %1103 = vst.msk [vmem:[%s295_s24 + $0x18] sm:$0xff] %vm309_vm0, %v1099_v6 }
 0x3a5   : > { %1558 = shalt.err (!%p1555_p13)
}
 0x3a6   : > { %s1559_s28 = scalar_lea.hbm %s2009_s30, 512  ;;  %s1563_s10 = scalar_lea.hbm %s2062_s3, 1024 }
 0x3a7   : > { %p1560_p11 = scmp.ne.s32.totalorder %s2009_s30, %s1559_s28  ;;  %p1564_p7 = scmp.lt.u32.totalorder %s2009_s30, %s2062_s3 }
 0x3a8   : > { %p1565_p4 = scmp.lt.u32.totalorder %s1563_s10, %s1559_s28  ;;  %p1567_p0 = scmp.lt.u32.totalorder %s1559_s28, %s2009_s30 }
 0x3a9   : > { %p1561_p2 = pnand %p1560_p11, %p2091_p10 }
 0x3aa   : > { %p1566_p3 = por %p1565_p4, %p1564_p7 }
 0x3ab   : > { %p1562_p5 = pneg %p1561_p2 }
 0x3ac   : > { %p1568_p8 = por %p1567_p0, %p1566_p3 }
 0x3ae   : > { %p1569_p9 = pnand %p1568_p8, %p1562_p5 }
 0x3b0   : > { %1572 = shalt.err (!%p1569_p9)
}
 0x3b1   : > { %s1643_s11 = smov 128   ;;  %s1644_s19 = smov 8  }
 0x3b2   : > { %1355 = dma.vmem_to_hbm [thread:$0]  (%p2091_p10), %s2003_s16, 512, %s2009_s30, %s1105_s6, %s1643_s11, %s1643_s11, %s1644_s19  }
 0x3b3 PF: > { %s1134_s9 = sand.u32 1, %s1611_s12   ;;  %p2092_p12 = scmp.ne.s32.totalorder %s2079_s27, 0 }
 0x3b4   : > { %p2093_p1 = scmp.ge.s32.totalorder %s1631_s17, 2  ;;  %s1135_s18 = scalar_lea.sflag [#allocation7], %s1134_s9 }
 0x3b6   : > { %p1368_p6 = pnand %p2093_p1, %p2092_p12 }
 0x3b8   : > { %1606 = dma.done.wait (!%p1368_p6), %s1135_s18, 512  }
 0x3b9   : > { %1608 = vsyncadd (!%p1368_p6), %s1135_s18, 4294966784  ;;  %s22_s17 = sadd.s32 1, %s1631_s17   ;;  %s2094_s24 = sld [smem:[#allocation17_spill]] }
 0x3ba   : > { %p19_p13 = scmp.ge.s32.totalorder %s22_s17, 4   ;;  %s2095_s15 = sld [smem:[#allocation15_spill]] }
 0x3bb   : > { %s2096_s16 = sld [smem:[#allocation16_spill]]  ;;  %s2097_s12 = smov %s1615_s13 }
 0x3bc   : > { %s2098_s13 = smov %s1619_s14  ;;  %21 = sbr.rel (!%p19_p13) target bundleno = 10 (0xa), region = 109 }
 0x3bf   : > { %s2099_s14 = smov %s2094_s24 }
 0x3c3   :  { %1140 = vsyncpa [#allocation6], 1 }
 0x3c4   :  { %1142 = vsyncpa [#allocation6 + $0x1], 1 }
 0x3c5   :  { %1143 = vsyncpa [#allocation9], 1 }
 0x3c6   :  { %1145 = vsyncpa [#allocation9 + $0x1], 1 }
 0x3c7   :  { %1146 = vsyncpa [#allocation7], 1 }
 0x3c8   :  { %1148 = vsyncpa [#allocation7 + $0x1], 1 }

</bundles_post_ra>
